<compile_context>
chip_gen: v5e
topology: v5e:2x2
jax: 0.10.0
libtpu: 0.0.40
codegen_flags: <defaults>
</compile_context>

<pallas_src>
import functools
import math

import jax
import jax.numpy as jnp
from jax import lax
from jax.experimental import pallas as pl
from jax.experimental.pallas import tpu as pltpu


_INV_SQRT2 = 1.0 / math.sqrt(2.0)
_BF16, _F32 = 2, 4


def _round_up(x, m):
    return ((x + m - 1) // m) * m


def _cdiv(a, b):
    return (a + b - 1) // b


# ----------------------------- kernel bodies --------------------------------


def _layernorm_f32(x, gamma, beta, eps):
    mean = jnp.mean(x, axis=-1, keepdims=True)
    var = jnp.mean((x - mean) ** 2, axis=-1, keepdims=True)
    return (x - mean) * lax.rsqrt(var + eps) * gamma + beta


def _gelu_erf_f32(h):
    # Exact erf GELU (nn.GELU default), kept in f32 for v5e portability.
    # TODO(synk): on v6e/v7x a bf16 / tanh-approx GELU would offload to the EUP
    # once the kernel is compute-bound; omitted to keep exact module parity.
    return 0.5 * h * (1.0 + lax.erf(h * _INV_SQRT2))


def mlp_resident_kernel(x_ref, gamma_ref, beta_ref, w1_ref, b1_ref, w2_ref,
                        b2_ref, o_ref, *, eps):
    """Grid = (token_tiles,).  W1/W2 VMEM-resident via constant index maps."""
    x = x_ref[...].astype(jnp.float32)                          # (tm, E)
    xn = _layernorm_f32(x, gamma_ref[...], beta_ref[...], eps)
    h = jnp.dot(xn.astype(jnp.bfloat16), w1_ref[...],
                preferred_element_type=jnp.float32)             # (tm, M) f32
    h = _gelu_erf_f32(h + b1_ref[...])
    # Dropout: identity in eval mode.
    out = jnp.dot(h.astype(jnp.bfloat16), w2_ref[...],
                  preferred_element_type=jnp.float32) + b2_ref[...]
    o_ref[...] = out.astype(o_ref.dtype)


def mlp_tiled_kernel(x_ref, gamma_ref, beta_ref, w1_ref, b1_ref, w2_ref,
                     b2_ref, o_ref, xn_ref, acc_ref, *, eps):
    """Grid = (token_tiles, M_tiles).  Axis 1 is the reduction over M chunks."""
    k = pl.program_id(1)

    # ---- once per token tile: LayerNorm -> bf16 cache, acc init with b2 ----
    @pl.when(k == 0)
    def _():
        x = x_ref[...].astype(jnp.float32)
        xn = _layernorm_f32(x, gamma_ref[...], beta_ref[...], eps)
        xn_ref[...] = xn.astype(xn_ref.dtype)
        # Fold the output bias into the accumulator init (no epilogue add).
        acc_ref[...] = jnp.broadcast_to(b2_ref[...], acc_ref.shape)

    # ---- Linear1 chunk (E -> tM), bf16 MXU operands, f32 accumulate ----
    h = jnp.dot(xn_ref[...], w1_ref[...],
                preferred_element_type=jnp.float32)             # (tm, tM)
    h = _gelu_erf_f32(h + b1_ref[...])
    # Dropout: identity in eval mode.

    # ---- Linear2 chunk (tM -> E): accumulate partial products in f32 ----
    acc_ref[...] += jnp.dot(h.astype(jnp.bfloat16), w2_ref[...],
                            preferred_element_type=jnp.float32)

    @pl.when(k == pl.num_programs(1) - 1)
    def _():
        o_ref[...] = acc_ref[...].astype(o_ref.dtype)


# ----------------------------- tile planning --------------------------------


def _vmem_budget_bytes():
    """~85% of physical VMEM: ~54 MiB on v7x, ~108 MiB on v5e/v6e."""
    try:
        cap = int(pltpu.get_tpu_info().vmem_capacity_bytes)
    except Exception:
        cap = 64 << 20
    if cap < (32 << 20):
        cap = 64 << 20
    return int(cap * 0.85)


def _resident_vmem_bytes(tm, e, m):
    est = (
        tm * e * _F32 * 2            # x tile (double buffered)
        + tm * e * _F32 * 2          # out tile (double buffered)
        + e * m * _BF16 * 2          # W1 (2 pipeline buffers, DMA'd once)
        + m * e * _BF16 * 2          # W2
        + (m + 3 * e) * _F32 * 2     # b1 / gamma / beta / b2
        + tm * m * _F32              # h intermediate
        + tm * e * _F32              # xn intermediate
    )
    return int(est * 1.2)


def _tiled_vmem_bytes(tm, e, tm_m):
    est = (
        tm * e * _F32 * 2            # x tile
        + tm * e * _F32 * 2          # out tile
        + e * tm_m * _BF16 * 2       # W1 chunk
        + tm_m * e * _BF16 * 2       # W2 chunk
        + (tm_m + 3 * e) * _F32 * 2  # biases / LN params
        + tm * e * (_BF16 + _F32)    # xn cache + acc scratch
        + tm * tm_m * _F32           # h intermediate
    )
    return int(est * 1.2)


def _plan_tiles(tokens, e, m, token_tile, budget):
    """Pick (token_tile, m_tile); m_tile=None means weights VMEM-resident."""
    tm = max(16, _round_up(min(token_tile, _round_up(tokens, 16)), 16))
    # Prefer >= 2 token tiles so the "parallel" axis spans both v7x TCs.
    if tokens >= 32 and _cdiv(tokens, tm) < 2:
        tm = max(16, _round_up(_cdiv(tokens, 2), 16))
    m_candidates = (2048, 1536, 1024, 768, 512, 384, 256, 128)
    while True:
        if _resident_vmem_bytes(tm, e, m) <= budget:
            return tm, None
        for c in m_candidates:
            if c >= m:
                continue
            if _tiled_vmem_bytes(tm, e, c) <= budget:
                return tm, c
        if tm <= 16:
            return 16, 128           # last resort; compiler takes it from here
        tm = max(16, _round_up(tm // 2, 16))


# ----------------------------- wrapper ---------------------------------------


def mlp_block(x, gamma, beta, w1, b1, w2, b2, *, eps=1e-5, token_tile=512,
              force_m_tile=None):
    """x: (B, S, E); w1: (E, M); w2: (M, E).  Returns (B, S, E).

    Pass w1/w2 already cast to bf16 (once, outside the hot path); the wrapper
    only casts as a fallback."""
    B, S, E = x.shape
    M = w1.shape[1]
    tokens = B * S

    budget = _vmem_budget_bytes()
    if force_m_tile is not None:
        tm = max(16, _round_up(min(token_tile, _round_up(tokens, 16)), 16))
        tm_m = int(force_m_tile)
    else:
        tm, tm_m = _plan_tiles(tokens, E, M, token_tile, budget)

    padded_tokens = _round_up(tokens, tm)
    x2 = x.reshape(tokens, E)
    if padded_tokens != tokens:
        x2 = jnp.pad(x2, ((0, padded_tokens - tokens), (0, 0)))

    # bf16 MXU operands; cast is hoisted to the caller, this is a fallback only.
    w1_bf = w1 if w1.dtype == jnp.bfloat16 else w1.astype(jnp.bfloat16)
    w2_bf = w2 if w2.dtype == jnp.bfloat16 else w2.astype(jnp.bfloat16)
    gamma2 = gamma.reshape(1, E).astype(jnp.float32)
    beta2 = beta.reshape(1, E).astype(jnp.float32)
    b1_2 = b1.reshape(1, M).astype(jnp.float32)
    b2_2 = b2.reshape(1, E).astype(jnp.float32)

    cost = pl.CostEstimate(
        flops=4 * tokens * E * M,               # two (tokens,E)x(E,M) matmuls
        transcendentals=tokens * M,             # erf per hidden element
        bytes_accessed=(2 * tokens * E * _F32   # x in, y out
                        + 2 * E * M * _BF16     # W1 + W2 (fetched once)
                        + (M + 3 * E) * _F32),
    )

    if tm_m is None:
        # ---------------- resident-weights path (single grid axis) ----------
        grid = (padded_tokens // tm,)
        vmem_limit = min(budget, max(_resident_vmem_bytes(tm, E, M), 32 << 20))
        out = pl.pallas_call(
            functools.partial(mlp_resident_kernel, eps=eps),
            out_shape=jax.ShapeDtypeStruct((padded_tokens, E), x.dtype),
            grid_spec=pltpu.PrefetchScalarGridSpec(
                num_scalar_prefetch=0,
                grid=grid,
                in_specs=[
                    pl.BlockSpec((tm, E), lambda i: (i, 0)),   # x tile
                    pl.BlockSpec((1, E), lambda i: (0, 0)),    # gamma
                    pl.BlockSpec((1, E), lambda i: (0, 0)),    # beta
                    pl.BlockSpec((E, M), lambda i: (0, 0)),    # W1 (resident)
                    pl.BlockSpec((1, M), lambda i: (0, 0)),    # b1
                    pl.BlockSpec((M, E), lambda i: (0, 0)),    # W2 (resident)
                    pl.BlockSpec((1, E), lambda i: (0, 0)),    # b2
                ],
                out_specs=pl.BlockSpec((tm, E), lambda i: (i, 0)),
            ),
            compiler_params=pltpu.CompilerParams(
                dimension_semantics=("parallel",),
                vmem_limit_bytes=vmem_limit,
            ),
            cost_estimate=cost,
        )(x2, gamma2, beta2, w1_bf, b1_2, w2_bf, b2_2)
    else:
        # ---------------- tiled-M reduction path (fallback) -----------------
        M_pad = _round_up(M, tm_m)
        if M_pad != M:
            # Zero-pad hidden dim: GELU(0)=0 and zero W2 rows contribute 0.
            w1_bf = jnp.pad(w1_bf, ((0, 0), (0, M_pad - M)))
            b1_2 = jnp.pad(b1_2, ((0, 0), (0, M_pad - M)))
            w2_bf = jnp.pad(w2_bf, ((0, M_pad - M), (0, 0)))
        grid = (padded_tokens // tm, M_pad // tm_m)
        vmem_limit = min(budget, max(_tiled_vmem_bytes(tm, E, tm_m), 32 << 20))
        out = pl.pallas_call(
            functools.partial(mlp_tiled_kernel, eps=eps),
            out_shape=jax.ShapeDtypeStruct((padded_tokens, E), x.dtype),
            grid_spec=pltpu.PrefetchScalarGridSpec(
                num_scalar_prefetch=0,
                grid=grid,
                in_specs=[
                    pl.BlockSpec((tm, E), lambda i, k: (i, 0)),     # x tile
                    pl.BlockSpec((1, E), lambda i, k: (0, 0)),      # gamma
                    pl.BlockSpec((1, E), lambda i, k: (0, 0)),      # beta
                    pl.BlockSpec((E, tm_m), lambda i, k: (0, k)),   # W1 chunk
                    pl.BlockSpec((1, tm_m), lambda i, k: (0, k)),   # b1 chunk
                    pl.BlockSpec((tm_m, E), lambda i, k: (k, 0)),   # W2 chunk
                    pl.BlockSpec((1, E), lambda i, k: (0, 0)),      # b2
                ],
                out_specs=pl.BlockSpec((tm, E), lambda i, k: (i, 0)),
                scratch_shapes=[
                    pltpu.VMEM((tm, E), jnp.bfloat16),   # cached LayerNorm out
                    pltpu.VMEM((tm, E), jnp.float32),    # Linear2 accumulator
                ],
            ),
            compiler_params=pltpu.CompilerParams(
                dimension_semantics=("parallel", "arbitrary"),
                vmem_limit_bytes=vmem_limit,
            ),
            cost_estimate=cost,
        )(x2, gamma2, beta2, w1_bf, b1_2, w2_bf, b2_2)

    return out[:tokens].reshape(B, S, E)


# ----------------------------- references ------------------------------------


def _layernorm_ref(x, gamma, beta, eps):
    xf = x.astype(jnp.float32)
    mean = jnp.mean(xf, axis=-1, keepdims=True)
    var = jnp.mean((xf - mean) ** 2, axis=-1, keepdims=True)
    return (xf - mean) * lax.rsqrt(var + eps) * gamma + beta


def reference_f32(x, gamma, beta, w1, b1, w2, b2, eps=1e-5):
    """Pure f32 reference (matches the PyTorch module in f32, eval mode)."""
    xn = _layernorm_ref(x, gamma, beta, eps)
    h = xn @ w1 + b1
    h = 0.5 * h * (1.0 + lax.erf(h / jnp.sqrt(2.0)))
    return (h @ w2 + b2).astype(x.dtype)


def reference_bf16_mxu(x, gamma, beta, w1, b1, w2, b2, eps=1e-5):
    """Reference with bf16 rounding at the same MXU boundaries as the kernel."""
    xn = _layernorm_ref(x, gamma, beta, eps)
    xn = xn.astype(jnp.bfloat16).astype(jnp.float32)
    w1b = w1.astype(jnp.bfloat16).astype(jnp.float32)
    w2b = w2.astype(jnp.bfloat16).astype(jnp.float32)
    h = xn @ w1b + b1
    h = 0.5 * h * (1.0 + lax.erf(h / jnp.sqrt(2.0)))
    h = h.astype(jnp.bfloat16).astype(jnp.float32)
    return (h @ w2b + b2).astype(x.dtype)


# ----------------------------- self-test --------------------------------------


if __name__ == "__main__":
    # ---- Test 1: small module shapes (batch=2, seq=8, embed=32, mlp=64). ----
    # Resident-weights path.
    B, S, E, M = 2, 8, 32, 64
    key = jax.random.PRNGKey(0)
    kx, kg, kb, kw1, kb1, kw2, kb2 = jax.random.split(key, 7)

    x = jax.random.normal(kx, (B, S, E), dtype=jnp.float32)
    gamma = 1.0 + 0.01 * jax.random.normal(kg, (E,), dtype=jnp.float32)
    beta = 0.01 * jax.random.normal(kb, (E,), dtype=jnp.float32)
    # Torch Linear stores weight as (out, in); we keep the (in, out) transpose.
    w1 = jax.random.normal(kw1, (E, M), dtype=jnp.float32) / math.sqrt(E)
    b1 = 0.01 * jax.random.normal(kb1, (M,), dtype=jnp.float32)
    w2 = jax.random.normal(kw2, (M, E), dtype=jnp.float32) / math.sqrt(M)
    b2 = 0.01 * jax.random.normal(kb2, (E,), dtype=jnp.float32)

    # Hoisted one-time bf16 cast of MXU weights (outside the hot path/wrapper).
    w1_bf = w1.astype(jnp.bfloat16)
    w2_bf = w2.astype(jnp.bfloat16)

    out = jax.block_until_ready(mlp_block(x, gamma, beta, w1_bf, b1, w2_bf, b2))
    assert out.shape == (B, S, E)

    ref_bf = reference_bf16_mxu(x, gamma, beta, w1, b1, w2, b2)
    assert jnp.allclose(out, ref_bf, atol=2e-3, rtol=2e-3), \
        "resident path: mismatch vs bf16-matched reference"
    ref32 = reference_f32(x, gamma, beta, w1, b1, w2, b2)
    assert jnp.allclose(out, ref32, atol=5e-2, rtol=5e-2), \
        "resident path: mismatch vs f32 reference"

    # ---- Test 2: force the tiled-M reduction path (E=128, M=256, tile=128). ----
    B2, S2, E2, M2 = 2, 8, 128, 256
    k2 = jax.random.split(jax.random.PRNGKey(1), 7)
    x_b = jax.random.normal(k2[0], (B2, S2, E2), dtype=jnp.float32)
    gamma_b = 1.0 + 0.01 * jax.random.normal(k2[1], (E2,), dtype=jnp.float32)
    beta_b = 0.01 * jax.random.normal(k2[2], (E2,), dtype=jnp.float32)
    w1_b = jax.random.normal(k2[3], (E2, M2), dtype=jnp.float32) / math.sqrt(E2)
    b1_b = 0.01 * jax.random.normal(k2[4], (M2,), dtype=jnp.float32)
    w2_b = jax.random.normal(k2[5], (M2, E2), dtype=jnp.float32) / math.sqrt(M2)
    b2_b = 0.01 * jax.random.normal(k2[6], (E2,), dtype=jnp.float32)

    out_b = jax.block_until_ready(
        mlp_block(x_b, gamma_b, beta_b, w1_b.astype(jnp.bfloat16), b1_b,
                  w2_b.astype(jnp.bfloat16), b2_b, force_m_tile=128))
    assert out_b.shape == (B2, S2, E2)
    ref_b = reference_bf16_mxu(x_b, gamma_b, beta_b, w1_b, b1_b, w2_b, b2_b)
    assert jnp.allclose(out_b, ref_b, atol=2e-3, rtol=2e-3), \
        "tiled path: mismatch vs bf16-matched reference"

    print("KERNEL_OK")
</pallas_src>

<mosaic_0001>
module attributes {stable_mosaic.version = 11 : i64} {
  func.func @mlp_resident_kernel(%arg0: i32, %arg1: memref<16x32xf32, #tpu.memory_space<vmem>>, %arg2: memref<1x32xf32, #tpu.memory_space<vmem>>, %arg3: memref<1x32xf32, #tpu.memory_space<vmem>>, %arg4: memref<32x64xbf16, #tpu.memory_space<vmem>>, %arg5: memref<1x64xf32, #tpu.memory_space<vmem>>, %arg6: memref<64x32xbf16, #tpu.memory_space<vmem>>, %arg7: memref<1x32xf32, #tpu.memory_space<vmem>>, %arg8: memref<16x32xf32, #tpu.memory_space<vmem>>) attributes {dimension_semantics = [#tpu.dimension_semantics<parallel>], iteration_bounds = array<i64: 1>, scalar_prefetch = 0 : i64, scratch_operands = 0 : i64, tpu.core_type = #tpu.core_type<tc>, window_params = [{transform_indices = @transform_0, window_bounds = array<i64: 16, 32>}, {pipeline_mode = #tpu.pipeline_mode<synchronous>, transform_indices = @transform_1, window_bounds = array<i64: 1, 32>}, {pipeline_mode = #tpu.pipeline_mode<synchronous>, transform_indices = @transform_2, window_bounds = array<i64: 1, 32>}, {pipeline_mode = #tpu.pipeline_mode<synchronous>, transform_indices = @transform_3, window_bounds = array<i64: 32, 64>}, {pipeline_mode = #tpu.pipeline_mode<synchronous>, transform_indices = @transform_4, window_bounds = array<i64: 1, 64>}, {pipeline_mode = #tpu.pipeline_mode<synchronous>, transform_indices = @transform_5, window_bounds = array<i64: 64, 32>}, {pipeline_mode = #tpu.pipeline_mode<synchronous>, transform_indices = @transform_6, window_bounds = array<i64: 1, 32>}, {transform_indices = @transform_7, window_bounds = array<i64: 16, 32>}]} {
    %c0 = arith.constant 0 : index
    %c0_0 = arith.constant 0 : index
    %0 = vector.load %arg1[%c0, %c0_0] : memref<16x32xf32, #tpu.memory_space<vmem>>, vector<16x32xf32>
    %c0_1 = arith.constant 0 : index
    %c0_2 = arith.constant 0 : index
    %1 = vector.load %arg2[%c0_1, %c0_2] : memref<1x32xf32, #tpu.memory_space<vmem>>, vector<1x32xf32>
    %c0_3 = arith.constant 0 : index
    %c0_4 = arith.constant 0 : index
    %2 = vector.load %arg3[%c0_3, %c0_4] : memref<1x32xf32, #tpu.memory_space<vmem>>, vector<1x32xf32>
    %cst = arith.constant dense<0.000000e+00> : vector<16xf32>
    %3 = vector.multi_reduction <add>, %0, %cst [1] : vector<16x32xf32> to vector<16xf32>
    %4 = vector.shape_cast %3 : vector<16xf32> to vector<16x1xf32>
    %cst_5 = arith.constant 3.200000e+01 : f32
    %5 = vector.broadcast %cst_5 : f32 to vector<16x1xf32>
    %6 = arith.divf %4, %5 : vector<16x1xf32>
    %7 = vector.broadcast %6 : vector<16x1xf32> to vector<16x32xf32>
    %8 = arith.subf %0, %7 : vector<16x32xf32>
    %9 = arith.mulf %8, %8 : vector<16x32xf32>
    %cst_6 = arith.constant dense<0.000000e+00> : vector<16xf32>
    %10 = vector.multi_reduction <add>, %9, %cst_6 [1] : vector<16x32xf32> to vector<16xf32>
    %11 = vector.shape_cast %10 : vector<16xf32> to vector<16x1xf32>
    %cst_7 = arith.constant 3.200000e+01 : f32
    %12 = vector.broadcast %cst_7 : f32 to vector<16x1xf32>
    %13 = arith.divf %11, %12 : vector<16x1xf32>
    %14 = vector.broadcast %6 : vector<16x1xf32> to vector<16x32xf32>
    %15 = arith.subf %0, %14 : vector<16x32xf32>
    %cst_8 = arith.constant 9.99999974E-6 : f32
    %16 = vector.broadcast %cst_8 : f32 to vector<16x1xf32>
    %17 = arith.addf %13, %16 : vector<16x1xf32>
    %18 = math.rsqrt %17 : vector<16x1xf32>
    %19 = vector.broadcast %18 : vector<16x1xf32> to vector<16x32xf32>
    %20 = arith.mulf %15, %19 : vector<16x32xf32>
    %21 = vector.broadcast %1 : vector<1x32xf32> to vector<16x32xf32>
    %22 = arith.mulf %20, %21 : vector<16x32xf32>
    %23 = vector.broadcast %2 : vector<1x32xf32> to vector<16x32xf32>
    %24 = arith.addf %22, %23 : vector<16x32xf32>
    %25 = arith.truncf %24 : vector<16x32xf32> to vector<16x32xbf16>
    %c0_9 = arith.constant 0 : index
    %c0_10 = arith.constant 0 : index
    %26 = vector.load %arg4[%c0_9, %c0_10] : memref<32x64xbf16, #tpu.memory_space<vmem>>, vector<32x64xbf16>
    %cst_11 = arith.constant dense<0.000000e+00> : vector<16x64xf32>
    %27 = tpu.matmul %25, %26, %cst_11 {dimension_numbers = #tpu.dot_dimension_numbers<[1], [0], [0], [1], [0, 0, 1, 1], [], []>} : vector<16x32xbf16>, vector<32x64xbf16>, vector<16x64xf32> -> vector<16x64xf32>
    %c0_12 = arith.constant 0 : index
    %c0_13 = arith.constant 0 : index
    %28 = vector.load %arg5[%c0_12, %c0_13] : memref<1x64xf32, #tpu.memory_space<vmem>>, vector<1x64xf32>
    %29 = vector.broadcast %28 : vector<1x64xf32> to vector<16x64xf32>
    %30 = arith.addf %27, %29 : vector<16x64xf32>
    %cst_14 = arith.constant 5.000000e-01 : f32
    %31 = vector.broadcast %cst_14 : f32 to vector<16x64xf32>
    %32 = arith.mulf %31, %30 : vector<16x64xf32>
    %cst_15 = arith.constant 0.707106769 : f32
    %33 = vector.broadcast %cst_15 : f32 to vector<16x64xf32>
    %34 = arith.mulf %30, %33 : vector<16x64xf32>
    %35 = math.erf %34 : vector<16x64xf32>
    %cst_16 = arith.constant 1.000000e+00 : f32
    %36 = vector.broadcast %cst_16 : f32 to vector<16x64xf32>
    %37 = arith.addf %36, %35 : vector<16x64xf32>
    %38 = arith.mulf %32, %37 : vector<16x64xf32>
    %39 = arith.truncf %38 : vector<16x64xf32> to vector<16x64xbf16>
    %c0_17 = arith.constant 0 : index
    %c0_18 = arith.constant 0 : index
    %40 = vector.load %arg6[%c0_17, %c0_18] : memref<64x32xbf16, #tpu.memory_space<vmem>>, vector<64x32xbf16>
    %cst_19 = arith.constant dense<0.000000e+00> : vector<16x32xf32>
    %41 = tpu.matmul %39, %40, %cst_19 {dimension_numbers = #tpu.dot_dimension_numbers<[1], [0], [0], [1], [0, 0, 1, 1], [], []>} : vector<16x64xbf16>, vector<64x32xbf16>, vector<16x32xf32> -> vector<16x32xf32>
    %c0_20 = arith.constant 0 : index
    %c0_21 = arith.constant 0 : index
    %42 = vector.load %arg7[%c0_20, %c0_21] : memref<1x32xf32, #tpu.memory_space<vmem>>, vector<1x32xf32>
    %43 = vector.broadcast %42 : vector<1x32xf32> to vector<16x32xf32>
    %44 = arith.addf %41, %43 : vector<16x32xf32>
    %c0_22 = arith.constant 0 : index
    %c0_23 = arith.constant 0 : index
    %45 = vector.load %arg8[%c0_22, %c0_23] : memref<16x32xf32, #tpu.memory_space<vmem>>, vector<16x32xf32>
    tpu.vector_store %arg8[%c0_22, %c0_23], %44 {strides = array<i32>} : memref<16x32xf32, #tpu.memory_space<vmem>>, vector<16x32xf32>,
    return
  }
  func.func @transform_0(%arg0: i32) -> (i32, i32) {
    %c0_i32 = arith.constant 0 : i32
    %c0_i32_0 = arith.constant 0 : i32
    return %arg0, %c0_i32 : i32, i32
  }
  func.func @transform_1(%arg0: i32) -> (i32, i32) {
    %c0_i32 = arith.constant 0 : i32
    %c0_i32_0 = arith.constant 0 : i32
    %c0_i32_1 = arith.constant 0 : i32
    return %c0_i32, %c0_i32_0 : i32, i32
  }
  func.func @transform_2(%arg0: i32) -> (i32, i32) {
    %c0_i32 = arith.constant 0 : i32
    %c0_i32_0 = arith.constant 0 : i32
    %c0_i32_1 = arith.constant 0 : i32
    return %c0_i32, %c0_i32_0 : i32, i32
  }
  func.func @transform_3(%arg0: i32) -> (i32, i32) {
    %c0_i32 = arith.constant 0 : i32
    %c0_i32_0 = arith.constant 0 : i32
    %c0_i32_1 = arith.constant 0 : i32
    return %c0_i32, %c0_i32_0 : i32, i32
  }
  func.func @transform_4(%arg0: i32) -> (i32, i32) {
    %c0_i32 = arith.constant 0 : i32
    %c0_i32_0 = arith.constant 0 : i32
    %c0_i32_1 = arith.constant 0 : i32
    return %c0_i32, %c0_i32_0 : i32, i32
  }
  func.func @transform_5(%arg0: i32) -> (i32, i32) {
    %c0_i32 = arith.constant 0 : i32
    %c0_i32_0 = arith.constant 0 : i32
    %c0_i32_1 = arith.constant 0 : i32
    return %c0_i32, %c0_i32_0 : i32, i32
  }
  func.func @transform_6(%arg0: i32) -> (i32, i32) {
    %c0_i32 = arith.constant 0 : i32
    %c0_i32_0 = arith.constant 0 : i32
    %c0_i32_1 = arith.constant 0 : i32
    return %c0_i32, %c0_i32_0 : i32, i32
  }
  func.func @transform_7(%arg0: i32) -> (i32, i32) {
    %c0_i32 = arith.constant 0 : i32
    %c0_i32_0 = arith.constant 0 : i32
    return %arg0, %c0_i32 : i32, i32
  }
}

</mosaic_0001>

<bundles_post_ra>
// kernel: tpu_custom_call.1
= control target key start
LH: loop header
LB: loop body
LE: loop exit
PB: predicated region body
PF: predicated region fallthrough
CT: control target
= control target key end

     0   :  { %vm32_vm0 = vcmask 261120   ;;  %s481_s0 = inlined_call_operand.vmem [shape: f32[16,32], index: 0, kind: input, shape index: {}]   ;;  %s482_s1 = inlined_call_operand.vmem [shape: f32[1,32], index: 1, kind: input, shape index: {}]   ;;  %s483_s2 = inlined_call_operand.vmem [shape: f32[1,32], index: 2, kind: input, shape index: {}]   ;;  %s484_s3 = inlined_call_operand.vmem [shape: bf16[32,64], index: 3, kind: input, shape index: {}]   ;;  %s485_s4 = inlined_call_operand.vmem [shape: f32[1,64], index: 4, kind: input, shape index: {}]   ;;  %s486_s5 = inlined_call_operand.vmem [shape: bf16[64,32], index: 5, kind: input, shape index: {}]   ;;  %s487_s6 = inlined_call_operand.vmem [shape: f32[1,32], index: 6, kind: input, shape index: {}]   ;;  %s488_s7 = inlined_call_operand.hbm [shape: f32[16,32], index: 7, kind: output, shape index: {}]  }
   0x1   :  { %v28_v0 = vld [vmem:[%s481_s0] sm:$0xff] }
   0x2   :  { %v33_v1 = vsel %vm32_vm0, %v28_v0, 0.0 }
   0x3   :  { %34 = vadd.xlane.f32.xlu0 %v33_v1 }
   0x4   :  { %12 = vsyncpa [#allocation3], 0  ;;  %v29_v2 = vld [vmem:[%s481_s0 + $0x8] sm:$0xff]  ;;  %v373_v4 = vmov 32.0   ;;  %v323_v23 = vld [vmem:[%s484_s3] sm:$0xff]  ;;  %s374_s19 = smov [#allocation2]  }
   0x5   :  { %v36_v3 = vsel %vm32_vm0, %v29_v2, 0.0  ;;  %337 = vrcp.f32 %v373_v4  ;;  %v324_v21 = vld [vmem:[%s484_s3 + $0x8] sm:$0xff]  ;;  %v333_v42 = vld [vmem:[%s482_s1] ss:$0 sm:$0xff]  ;;  %s281_s20 = sshll.u32 %s374_s19, 4  ;;  %s283_s23 = sshll.u32 %s488_s7, 4  ;;  %s282_s20 = int_to_ptr.vmem [resolvable:$true] %s281_s20  ;;  %s284_s23 = int_to_ptr.hbm [resolvable:$true] %s283_s23 }
   0x6   :  { %124 = vmatpush.bf16.msra.mxu0 %v324_v21  ;;  %v334_v47 = vld [vmem:[%s483_s2] ss:$0 sm:$0xff]  ;;  %s375_s24 = smov 128   ;;  %s376_s25 = smov 8  }
   0x7   :  { %v335_v52 = vld [vmem:[%s485_s4] ss:$0 sm:$0xff] }
   0xa   :  { %125 = vmatpush.bf16.msra.mxu0 %v323_v23  ;;  %v326_v23 = vld [vmem:[%s486_s5 + $0x8] sm:$0xff] }
   0xb   :  { %37 = vadd.xlane.f32.xlu0 %v36_v3  ;;  %v338_v5 = vpop.eup %337 }
   0xc   :  { %v40_v6 = vmul.f32 32.0, %v338_v5  ;;  %vm44_vm1 = vweird.f32 %v338_v5 }
   0xe   :  { %v41_v7 = vsub.f32 1.0, %v40_v6 }
  0x10   :  { %v42_v8 = vmul.f32 %v338_v5, %v41_v7  ;;  %v328_v7 = vld [vmem:[%s486_s5 + $0x18] sm:$0xff] }
  0x11   :  { %265 = vmatpush.bf16.msra.mxu1 %v328_v7 }
  0x12   :  { %v43_v9 = vadd.f32 %v338_v5, %v42_v8 }
  0x14   :  { %v45_v10 = vsel %vm44_vm1, %v338_v5, %v43_v9  ;;  %vm257_vm1 = vcmask 523264  }
  0x76   :  { %v35_v11 = vpop.xlane.xlu0 %34 }
  0x77   :  { %v46_v12 = vmul.f32 %v45_v10, %v35_v11 }
  0x79   :  { %v48_v13 = vsub.f32 %v28_v0, %v46_v12 }
  0x7b   :  { %v50_v14 = vmul.f32 %v48_v13, %v48_v13 }
  0x7d   :  { %v52_v15 = vsel %vm32_vm0, %v50_v14, 0.0 }
  0x7e   :  { %53 = vadd.xlane.f32.xlu1 %v52_v15  ;;  %v38_v16 = vpop.xlane.xlu0 %37  ;;  %v327_v15 = vld [vmem:[%s486_s5 + $0x10] sm:$0xff] }
  0x7f   :  { %v47_v17 = vmul.f32 %v45_v10, %v38_v16  ;;  %266 = vmatpush.bf16.msra.mxu1 %v327_v15 }
  0x81   :  { %v49_v18 = vsub.f32 %v29_v2, %v47_v17 }
  0x83   :  { %v51_v19 = vmul.f32 %v49_v18, %v49_v18  ;;  %267 = vmatpush.bf16.msra.mxu1 %v326_v23 }
  0x85   :  { %v55_v20 = vsel %vm32_vm0, %v51_v19, 0.0 }
  0x86   :  { %56 = vadd.xlane.f32.xlu1 %v55_v20 }
  0xf1   :  { %v54_v22 = vpop.xlane.xlu1 %53 }
  0xf2   :  { %v58_v24 = vmul.f32 %v54_v22, %v45_v10 }
  0xf4   :  { %v60_v25 = vadd.f32 1e-05, %v58_v24 }
  0xf6   :  { %339 = vrsqrt.f32 %v60_v25  ;;  %vm68_vm3 = vweird.f32 %v60_v25 }
  0xf9   :  { %v57_v26 = vpop.xlane.xlu1 %56 }
  0xfa   :  { %v59_v27 = vmul.f32 %v57_v26, %v45_v10 }
  0xfc   :  { %v340_v28 = vpop.eup %339  ;;  %v61_v29 = vadd.f32 1e-05, %v59_v27 }
  0xfd   :  { %v63_v30 = vmul.f32 %v340_v28, %v60_v25  ;;  %vm69_vm2 = vweird.f32 %v340_v28 }
  0xfe   :  { %341 = vrsqrt.f32 %v61_v29  ;;  %vm70_vm4 = vmor %vm68_vm3, %vm69_vm2  ;;  %vm78_vm6 = vweird.f32 %v61_v29 }
  0xff   :  { %v64_v31 = vmul.f32 %v340_v28, %v63_v30 }
 0x101   :  { %v65_v32 = vmul.f32 0.5, %v64_v31 }
 0x103   :  { %v66_v33 = vsub.f32 1.5, %v65_v32 }
 0x104   :  { %v342_v34 = vpop.eup %341 }
 0x105   :  { %v67_v35 = vmul.f32 %v340_v28, %v66_v33  ;;  %v73_v36 = vmul.f32 %v342_v34, %v61_v29  ;;  %vm79_vm5 = vweird.f32 %v342_v34  ;;  %v325_v29 = vld [vmem:[%s486_s5] sm:$0xff] }
 0x106   :  { %vm80_vm7 = vmor %vm78_vm6, %vm79_vm5  ;;  %268 = vmatpush.bf16.msra.mxu1 %v325_v29 }
 0x107   :  { %v74_v37 = vmul.f32 %v342_v34, %v73_v36  ;;  %v71_v38 = vsel %vm70_vm4, %v340_v28, %v67_v35 }
 0x108   :  { %v82_v41 = vmul.f32 %v71_v38, %v48_v13 }
 0x109   :  { %v75_v39 = vmul.f32 0.5, %v74_v37 }
 0x10a   :  { %v87_v46 = vmul.f32 %v333_v42, %v82_v41 }
 0x10b   :  { %v76_v40 = vsub.f32 1.5, %v75_v39 }
 0x10c   :  { %v92_v49 = vadd.f32 %v334_v47, %v87_v46 }
 0x10d   :  { %v77_v43 = vmul.f32 %v342_v34, %v76_v40 }
 0x10f   :  { %v81_v44 = vsel %vm80_vm7, %v342_v34, %v77_v43 }
 0x110   :  { %v83_v45 = vmul.f32 %v81_v44, %v49_v18 }
 0x112   :  { %v88_v48 = vmul.f32 %v333_v42, %v83_v45 }
 0x114   :  { %v93_v50 = vadd.f32 %v334_v47, %v88_v48 }
 0x116   :  { %v94_v51 = vpack.c.bf16 %v93_v50, %v92_v49 }
 0x118   :  { %303 = vmatmul.msk.bf16.vlgmr.msra.gmra.mxu0 %vm32_vm0, %v94_v51 }
 0x195   :  { %v127_v53 = vpop.f32.mrf.mxu0 }
 0x196   :  { %v443_v54 = vadd.f32 %v335_v52, %v127_v53 }
 0x198   :  { %v446_v55 = vmul.f32 0.70710677, %v443_v54 }
 0x19a   :  { %v136_v56 = vmul.f32 %v446_v55, %v446_v55 }
 0x19c   :  { %v137_v57 = vmin.f32 %v136_v56, 16.0 }
 0x19d   :  { %v129_v58 = vpop.f32.mrf.mxu0 }
 0x19e   :  { %v138_v59 = vmul.f32 2.1237322e-06, %v137_v57  ;;  %v149_v60 = vmul.f32 3.8918573e-05, %v137_v57  ;;  %v450_v61 = vadd.f32 %v335_v52, %v129_v58 }
 0x1a0   :  { %v139_v62 = vadd.f32 0.00028619796, %v138_v59  ;;  %v150_v63 = vadd.f32 0.001143296, %v149_v60  ;;  %v453_v0 = vmul.f32 0.70710677, %v450_v61 }
 0x1a2   :  { %v151_v1 = vmul.f32 %v150_v63, %v137_v57  ;;  %v176_v2 = vmul.f32 %v453_v0, %v453_v0  ;;  %v140_v3 = vmul.f32 %v139_v62, %v137_v57 }
 0x1a4   :  { %v152_v4 = vadd.f32 0.014752088, %v151_v1  ;;  %v177_v5 = vmin.f32 %v176_v2, 16.0  ;;  %v141_v10 = vadd.f32 0.0036580483, %v140_v3 }
 0x1a6   :  { %v153_v6 = vmul.f32 %v152_v4, %v137_v57  ;;  %v178_v8 = vmul.f32 2.1237322e-06, %v177_v5  ;;  %v189_v9 = vmul.f32 3.8918573e-05, %v177_v5  ;;  %v142_v18 = vmul.f32 %v141_v10, %v137_v57 }
 0x1a7   :  { %v133_v10 = vmul.f32 0.5, %v450_v61 }
 0x1a8   :  { %v154_v11 = vadd.f32 0.112945676, %v153_v6  ;;  %v179_v12 = vadd.f32 0.00028619796, %v178_v8  ;;  %v190_v13 = vadd.f32 0.001143296, %v189_v9 }
 0x1a9   :  { %v143_v25 = vadd.f32 0.05243302, %v142_v18  ;;  %v132_v9 = vmul.f32 0.5, %v443_v54 }
 0x1aa   :  { %v155_v14 = vmul.f32 %v154_v11, %v137_v57  ;;  %v180_v16 = vmul.f32 %v179_v12, %v177_v5  ;;  %v191_v17 = vmul.f32 %v190_v13, %v177_v5 }
 0x1ab   :  { %v144_v31 = vmul.f32 %v143_v25, %v137_v57 }
 0x1ac   :  { %v156_v19 = vadd.f32 0.4994258, %v155_v14  ;;  %v181_v20 = vadd.f32 0.0036580483, %v180_v16  ;;  %v192_v21 = vadd.f32 0.014752088, %v191_v17 }
 0x1ad   :  { %v145_v36 = vadd.f32 0.18741608, %v144_v31 }
 0x1ae   :  { %v157_v22 = vmul.f32 %v156_v19, %v137_v57  ;;  %v193_v24 = vmul.f32 %v192_v21, %v177_v5  ;;  %v182_v27 = vmul.f32 %v181_v20, %v177_v5 }
 0x1af   :  { %v146_v41 = vmul.f32 %v145_v36, %v137_v57 }
 0x1b0   :  { %v158_v26 = vadd.f32 1.0, %v157_v22  ;;  %v194_v28 = vadd.f32 0.112945676, %v193_v24  ;;  %v183_v32 = vadd.f32 0.05243302, %v182_v27 }
 0x1b1   :  { %v147_v47 = vadd.f32 1.1283791, %v146_v41 }
 0x1b2   :  { %343 = vrcp.f32 %v158_v26  ;;  %v195_v30 = vmul.f32 %v194_v28, %v177_v5  ;;  %v184_v38 = vmul.f32 %v183_v32, %v177_v5  ;;  %v170_v43 = vand.u32 2147483648, %v158_v26 }
 0x1b3   :  { %v168_v45 = vand.u32 2147483647, %v158_v26  ;;  %vm164_vm9 = vweird.f32 %v158_v26  ;;  %v148_v56 = vmul.f32 %v147_v47, %v446_v55 }
 0x1b4   :  { %v196_v33 = vadd.f32 0.4994258, %v195_v30  ;;  %v185_v44 = vadd.f32 0.18741608, %v184_v38  ;;  %v171_v50 = vor.u32 1.1754944e-38, %v170_v43 }
 0x1b5   :  { %vm169_vm11 = vcmp.eq.f32.partialorder %v168_v45, 8.507059e+37 }
 0x1b6   :  { %v197_v34 = vmul.f32 %v196_v33, %v177_v5  ;;  %v186_v51 = vmul.f32 %v185_v44, %v177_v5 }
 0x1b8   :  { %v344_v35 = vpop.eup %343  ;;  %v198_v39 = vadd.f32 1.0, %v197_v34  ;;  %v187_v57 = vadd.f32 1.1283791, %v186_v51 }
 0x1b9   :  { %v160_v37 = vmul.f32 %v344_v35, %v158_v26  ;;  %vm165_vm8 = vweird.f32 %v344_v35 }
 0x1ba   :  { %345 = vrcp.f32 %v198_v39  ;;  %vm166_vm10 = vmor %vm164_vm9, %vm165_vm8  ;;  %v210_v59 = vand.u32 2147483648, %v198_v39  ;;  %v208_v63 = vand.u32 2147483647, %v198_v39  ;;  %vm204_vm13 = vweird.f32 %v198_v39 }
 0x1bb   :  { %v161_v40 = vsub.f32 1.0, %v160_v37  ;;  %v188_v4 = vmul.f32 %v187_v57, %v453_v0  ;;  %v336_v0 = vld [vmem:[%s487_s6] ss:$0 sm:$0xff] }
 0x1bc   :  { %v211_v2 = vor.u32 1.1754944e-38, %v210_v59  ;;  %vm209_vm15 = vcmp.eq.f32.partialorder %v208_v63, 8.507059e+37 }
 0x1bd   :  { %v162_v42 = vmul.f32 %v344_v35, %v161_v40 }
 0x1bf   :  { %v163_v46 = vadd.f32 %v344_v35, %v162_v42 }
 0x1c0   :  { %v346_v48 = vpop.eup %345 }
 0x1c1   :  { %v167_v49 = vsel %vm166_vm10, %v344_v35, %v163_v46  ;;  %v200_v52 = vmul.f32 %v346_v48, %v198_v39  ;;  %vm205_vm12 = vweird.f32 %v346_v48 }
 0x1c2   :  { %v172_v53 = vsel %vm169_vm11, %v171_v50, %v167_v49  ;;  %vm206_vm14 = vmor %vm204_vm13, %vm205_vm12 }
 0x1c3   :  { %v201_v58 = vsub.f32 1.0, %v200_v52  ;;  %v173_v60 = vmul.f32 %v172_v53, %v148_v56 }
 0x1c5   :  { %v202_v62 = vmul.f32 %v346_v48, %v201_v58  ;;  %v304_v3 = vclamps-f32 %v173_v60, 1.0 }
 0x1c7   :  { %v203_v1 = vadd.f32 %v346_v48, %v202_v62  ;;  %v216_v8 = vadd.f32 1.0, %v304_v3 }
 0x1c9   :  { %v207_v5 = vsel %vm206_vm14, %v346_v48, %v203_v1  ;;  %v218_v12 = vmul.f32 %v216_v8, %v132_v9 }
 0x1ca   :  { %v212_v6 = vsel %vm209_vm15, %v211_v2, %v207_v5 }
 0x1cb   :  { %v213_v7 = vmul.f32 %v212_v6, %v188_v4 }
 0x1cd   :  { %v305_v55 = vclamps-f32 %v213_v7, 1.0 }
 0x1cf   :  { %v217_v11 = vadd.f32 1.0, %v305_v55 }
 0x1d1   :  { %v219_v13 = vmul.f32 %v217_v11, %v133_v10 }
 0x1d3   :  { %v220_v14 = vpack.c.bf16 %v219_v13, %v218_v12 }
 0x1d5   :  { %322 = vmatmul.msk.bf16.vlgmr.msra.gmra.mxu1 %vm257_vm1, %v220_v14 }
 0x252   :  { %v270_v15 = vpop.f32.mrf.mxu1 }
 0x253   :  { %v271_v16 = vadd.f32 %v336_v0, %v270_v15 }
 0x255   :  { %275 = vst.msk [vmem:[#allocation2] sm:$0xff] %vm32_vm0, %v271_v16 }
 0x25a   :  { %v272_v54 = vpop.f32.mrf.mxu1 }
 0x25b   :  { %v273_v61 = vadd.f32 %v336_v0, %v272_v54 }
 0x25d   :  { %276 = vst.msk [vmem:[#allocation2 + $0x8] sm:$0xff] %vm32_vm0, %v273_v61 }
 0x25e   :  { %289 = dma.vmem_to_hbm [thread:$0]  %s282_s20, 256, %s284_s23, [#allocation3], %s375_s24, %s375_s24, %s376_s25  }
 0x25f   :  { %371 = dma.done.wait [#allocation3], 256  }
 0x260   :  { %372 = vsyncadd [#allocation3], 4294967040 }
 0x261   :  { %294 = vsyncpa [#allocation3], 1 }

</bundles_post_ra>
